<compile_context>
chip_gen: v5e
topology: v5e:2x2
jax: 0.10.0
libtpu: 0.0.40
codegen_flags: <defaults>
</compile_context>

<pallas_src>
import math
from functools import partial

import jax
import jax.numpy as jnp
from jax.experimental import pallas as pl
from jax.experimental.pallas import tpu as pltpu


# ----------------------------------------------------------------------------
# Shared helpers
# ----------------------------------------------------------------------------
def _layer_norm(v, w_ref, b_ref, eps=1e-5):
    mu = jnp.mean(v, axis=-1, keepdims=True)
    var = jnp.mean((v - mu) ** 2, axis=-1, keepdims=True)
    return (v - mu) * jax.lax.rsqrt(var + eps) * w_ref[0] + b_ref[0]


def _const_spec2(arr):
    # whole-array block, constant block index (revisited -> copy skipped).
    # TODO(synk): could be single-buffered via pipeline_mode=pl.Buffered(1) to
    # save the second VMEM buffer; kept default for lowering safety.
    nd = arr.ndim
    return pl.BlockSpec(arr.shape, lambda b, t, _nd=nd: (0,) * _nd)


# ----------------------------------------------------------------------------
# Kernel 1: LN1 + Q/K/V projections (head-major) + quantum branch
# ----------------------------------------------------------------------------
def _proj_kernel(num_heads, head_dim,
                 x_ref, ln1_w, ln1_b,
                 wq, bq, wk, bk, wv, bv, wqp, bqp, wqo_f,
                 qh_ref, kh_ref, vh_ref, qproj_ref):
    f32, bf16 = jnp.float32, jnp.bfloat16

    xn = _layer_norm(x_ref[0], ln1_w, ln1_b)              # [TS, H] f32
    xn_bf = xn.astype(bf16)

    # Quantum branch first: independent of attention, its small MXU pushes
    # overlap the later VPU-heavy per-head stores.  Wqo is pre-fused with Wo
    # on the host, so this already carries the output projection.
    q_state = jnp.tanh(
        jnp.dot(xn_bf, wqp[...], preferred_element_type=f32) + bqp[0])
    qproj_ref[0] = jnp.dot(q_state.astype(bf16), wqo_f[...],
                           preferred_element_type=f32)    # [TS, H] f32

    scale = 1.0 / math.sqrt(head_dim)
    # Full-width [TS,H]@[H,H] matmuls keep the MXU output dimension filled.
    q = (jnp.dot(xn_bf, wq[...], preferred_element_type=f32) + bq[0]) * scale
    k = jnp.dot(xn_bf, wk[...], preferred_element_type=f32) + bk[0]
    v = jnp.dot(xn_bf, wv[...], preferred_element_type=f32) + bv[0]

    # Head-major relayout happens exactly once per token, here; the attention
    # kernel then only indexes the leading head axis (no lane slicing there).
    for h in range(num_heads):
        sl = slice(h * head_dim, (h + 1) * head_dim)
        qh_ref[0, h] = q[:, sl].astype(bf16)
        kh_ref[0, h] = k[:, sl].astype(bf16)
        vh_ref[0, h] = v[:, sl].astype(bf16)


# ----------------------------------------------------------------------------
# Kernel 2: flash-style multi-head attention (online softmax over KV tiles)
# ----------------------------------------------------------------------------
def _attn_kernel(qh_ref, kh_ref, vh_ref, amask_ref, ctx_ref,
                 m_sc, l_sc, acc_sc):
    f32, bf16 = jnp.float32, jnp.bfloat16
    ki = pl.program_id(2)

    @pl.when(ki == 0)
    def _():
        m_sc[...] = jnp.full(m_sc.shape, -jnp.inf, f32)
        l_sc[...] = jnp.zeros(l_sc.shape, f32)
        acc_sc[...] = jnp.zeros(acc_sc.shape, f32)

    q = qh_ref[0]                                 # [nh, TQ, hd] bf16 (pre-scaled)
    k = kh_ref[0]                                 # [nh, TK, hd] bf16
    v = vh_ref[0]                                 # [nh, TK, hd] bf16

    s = jnp.einsum("hqd,hkd->hqk", q, k,
                   preferred_element_type=f32)    # [nh, TQ, TK]
    s = s + amask_ref[0]                          # additive mask, precomputed

    m_prev = m_sc[...]
    m_new = jnp.maximum(m_prev, jnp.max(s, axis=-1, keepdims=True))
    alpha = jnp.exp(m_prev - m_new)
    p = jnp.exp(s - m_new)
    l_sc[...] = alpha * l_sc[...] + jnp.sum(p, axis=-1, keepdims=True)
    acc_sc[...] = alpha * acc_sc[...] + jnp.einsum(
        "hqk,hkd->hqd", p.astype(bf16), v, preferred_element_type=f32)
    m_sc[...] = m_new

    @pl.when(ki == pl.num_programs(2) - 1)
    def _():
        ctx_ref[0] = (acc_sc[...] / l_sc[...]).astype(ctx_ref.dtype)


# ----------------------------------------------------------------------------
# Kernel 3: output projection (head-summed) + residual + LN2 + FFN + residual
# ----------------------------------------------------------------------------
def _out_ffn_kernel(num_heads,
                    x_ref, ctx_ref, qproj_ref,
                    wo_h, bo_f, ln2_w, ln2_b, w1, b1, w2, b2,
                    o_ref):
    f32, bf16 = jnp.float32, jnp.bfloat16

    # (ctx + q_feat) @ Wo + bo  ==  sum_h ctx[h] @ Wo[h] + (q_feat @ Wo) + bo'
    # The head sum is accumulated directly into a [TS, H] f32 value — no
    # [nh, TS, H] intermediate is ever materialized.
    attn = qproj_ref[0] + bo_f[0]                           # [TS, H] f32
    for h in range(num_heads):
        attn = attn + jnp.dot(ctx_ref[0, h], wo_h[h],
                              preferred_element_type=f32)

    h1 = x_ref[0] + attn                                    # residual 1

    hn = _layer_norm(h1, ln2_w, ln2_b)
    ff = jnp.dot(hn.astype(bf16), w1[...], preferred_element_type=f32) + b1[0]
    # tanh-approx GELU (EUP slot); constants pre-folded to minimize VPU muls.
    C0 = math.sqrt(2.0 / math.pi)
    C1 = 0.044715 * C0
    ff2 = ff * ff
    ff = 0.5 * ff * (1.0 + jnp.tanh(ff * (C0 + C1 * ff2)))
    ff = jnp.dot(ff.astype(bf16), w2[...], preferred_element_type=f32) + b2[0]

    o_ref[0] = h1 + ff                                      # residual 2


# ----------------------------------------------------------------------------
# Wrapper
# ----------------------------------------------------------------------------
def _choose_tile(S):
    if S <= 512:
        return S
    for t in (512, 256, 128):
        if S % t == 0:
            return t
    return S


def _vmem_limit_bytes():
    cap = 64 * 2**20
    try:
        info = pltpu.get_tpu_info()
        cap = int(getattr(info, "vmem_capacity_bytes", cap))
    except Exception:
        pass
    # Leave headroom for Mosaic-internal scratch: ~112 MiB on 128 MiB parts
    # (v5e/v6e), ~56 MiB on 64 MiB parts (v7x).
    return int(max(32 * 2**20, min(cap - 8 * 2**20, 112 * 2**20)))


def _choose_attn_tiles(S, num_heads, vmem_limit):
    TQ = TK = _choose_tile(S)
    # Keep the live f32 score+prob block (~ nh*TQ*TK*8 bytes) well under the
    # per-kernel VMEM budget (matters on v7x); shrink TQ first, then TK.
    while TQ > 128 and TQ % 256 == 0 and num_heads * TQ * TK * 8 > vmem_limit // 4:
        TQ //= 2
    while TK > 128 and TK % 256 == 0 and num_heads * TQ * TK * 8 > vmem_limit // 4:
        TK //= 2
    return TQ, TK


def quantum_transformer_layer(x, params, num_heads, attention_mask=None):
    """x: [B, S, H] float32, attention_mask: optional [B, S] (1=keep, 0=mask)."""
    B, S, H = x.shape
    assert H % num_heads == 0
    hd = H // num_heads
    f32, bf16 = jnp.float32, jnp.bfloat16

    vmem_limit = _vmem_limit_bytes()
    TS = _choose_tile(S)
    TQ, TK = _choose_attn_tiles(S, num_heads, vmem_limit)

    # Additive mask precomputed once on the host (0 keep, -1e9 masked).
    if attention_mask is None:
        amask = jnp.zeros((B, 1, S), f32)
    else:
        amask = ((attention_mask.astype(f32) - 1.0) * 1e9).reshape(B, 1, S)

    bf = lambda w: w.astype(bf16)
    wq, wk, wv = bf(params["wq"]), bf(params["wk"]), bf(params["wv"])
    wqp = bf(params["wqp"])
    # Fold the quantum output Linear through the attention output projection:
    #   (ctx + tanh(.)@Wqo + bqo) @ Wo + bo
    #     = sum_h ctx[h]@Wo[h]  +  tanh(.)@(Wqo@Wo)  +  (bqo@Wo + bo)
    wqo_fused = bf(params["wqo"].astype(f32) @ params["wo"].astype(f32))
    bo_fused = (params["bqo"].astype(f32) @ params["wo"].astype(f32)
                + params["bo"].astype(f32))
    wo_h = bf(params["wo"]).reshape(num_heads, hd, H)       # head-major Wo
    w1, w2 = bf(params["w1"]), bf(params["w2"])

    def cparams(sem):
        return pltpu.CompilerParams(dimension_semantics=sem,
                                    vmem_limit_bytes=vmem_limit)

    # ---- call 1: LN1 + QKV (head-major) + quantum branch --------------------
    proj_weights = [params["ln1_w"], params["ln1_b"],
                    wq, params["bq"], wk, params["bk"], wv, params["bv"],
                    wqp, params["bqp"], wqo_fused]
    head_out_spec = pl.BlockSpec((1, num_heads, TS, hd),
                                 lambda b, t: (b, 0, t, 0))
    qh, kh, vh, qproj = pl.pallas_call(
        partial(_proj_kernel, num_heads, hd),
        grid=(B, S // TS),
        in_specs=[pl.BlockSpec((1, TS, H), lambda b, t: (b, t, 0))]
                 + [_const_spec2(p) for p in proj_weights],
        out_specs=(head_out_spec, head_out_spec, head_out_spec,
                   pl.BlockSpec((1, TS, H), lambda b, t: (b, t, 0))),
        out_shape=(jax.ShapeDtypeStruct((B, num_heads, S, hd), bf16),
                   jax.ShapeDtypeStruct((B, num_heads, S, hd), bf16),
                   jax.ShapeDtypeStruct((B, num_heads, S, hd), bf16),
                   jax.ShapeDtypeStruct((B, S, H), f32)),
        compiler_params=cparams(("parallel", "parallel")),
    )(x, *proj_weights)

    # ---- call 2: flash attention over KV tiles ------------------------------
    # Batch axis first so megacore sharding (v7x) splits along B and KV-tile
    # reuse of the resident Q block is preserved.
    ctx = pl.pallas_call(
        _attn_kernel,
        grid=(B, S // TQ, S // TK),
        in_specs=[
            pl.BlockSpec((1, num_heads, TQ, hd), lambda b, q, k: (b, 0, q, 0)),
            pl.BlockSpec((1, num_heads, TK, hd), lambda b, q, k: (b, 0, k, 0)),
            pl.BlockSpec((1, num_heads, TK, hd), lambda b, q, k: (b, 0, k, 0)),
            pl.BlockSpec((1, 1, TK), lambda b, q, k: (b, 0, k)),
        ],
        out_specs=pl.BlockSpec((1, num_heads, TQ, hd),
                               lambda b, q, k: (b, 0, q, 0)),
        out_shape=jax.ShapeDtypeStruct((B, num_heads, S, hd), bf16),
        scratch_shapes=[pltpu.VMEM((num_heads, TQ, 1), f32),   # m
                        pltpu.VMEM((num_heads, TQ, 1), f32),   # l
                        pltpu.VMEM((num_heads, TQ, hd), f32)], # acc
        compiler_params=cparams(("parallel", "parallel", "arbitrary")),
    )(qh, kh, vh, amask)

    # ---- call 3: output projection + residual + LN2 + FFN + residual --------
    ffn_weights = [wo_h, bo_fused, params["ln2_w"], params["ln2_b"],
                   w1, params["b1"], w2, params["b2"]]
    out = pl.pallas_call(
        partial(_out_ffn_kernel, num_heads),
        grid=(B, S // TS),
        in_specs=[pl.BlockSpec((1, TS, H), lambda b, t: (b, t, 0)),
                  pl.BlockSpec((1, num_heads, TS, hd), lambda b, t: (b, 0, t, 0)),
                  pl.BlockSpec((1, TS, H), lambda b, t: (b, t, 0))]
                 + [_const_spec2(p) for p in ffn_weights],
        out_specs=pl.BlockSpec((1, TS, H), lambda b, t: (b, t, 0)),
        out_shape=jax.ShapeDtypeStruct((B, S, H), f32),
        compiler_params=cparams(("parallel", "parallel")),
    )(x, ctx, qproj, *ffn_weights)

    return out


# ----------------------------------------------------------------------------
# Pure-JAX reference (bf16-rounded weights to match kernel storage, f32 math)
# ----------------------------------------------------------------------------
def reference(x, params, num_heads, attention_mask=None):
    B, S, H = x.shape
    hd = H // num_heads
    rw = lambda w: w.astype(jnp.bfloat16).astype(jnp.float32)

    def ln(v, w, b):
        mu = jnp.mean(v, axis=-1, keepdims=True)
        var = jnp.mean((v - mu) ** 2, axis=-1, keepdims=True)
        return (v - mu) / jnp.sqrt(var + 1e-5) * w[0] + b[0]

    def lin(v, w, b):
        return v @ w + b[0]

    xn = ln(x, params["ln1_w"], params["ln1_b"])
    q = lin(xn, rw(params["wq"]), params["bq"]).reshape(B, S, num_heads, hd)
    k = lin(xn, rw(params["wk"]), params["bk"]).reshape(B, S, num_heads, hd)
    v = lin(xn, rw(params["wv"]), params["bv"]).reshape(B, S, num_heads, hd)
    s = jnp.einsum("bqhd,bkhd->bhqk", q, k) / math.sqrt(hd)
    if attention_mask is not None:
        s = s + (attention_mask.astype(jnp.float32) - 1.0)[:, None, None, :] * 1e9
    p = jax.nn.softmax(s, axis=-1)
    attn = jnp.einsum("bhqk,bkhd->bqhd", p, v).reshape(B, S, H)
    qf = lin(jnp.tanh(lin(xn, rw(params["wqp"]), params["bqp"])),
             rw(params["wqo"]), params["bqo"])
    h1 = x + lin(attn + qf, rw(params["wo"]), params["bo"])

    hn = ln(h1, params["ln2_w"], params["ln2_b"])
    ff = lin(hn, rw(params["w1"]), params["b1"])
    ff = 0.5 * ff * (1.0 + jax.lax.erf(ff / math.sqrt(2.0)))   # exact GELU
    ff = lin(ff, rw(params["w2"]), params["b2"])
    return h1 + ff


# ----------------------------------------------------------------------------
# Deterministic parameter init + demo
# ----------------------------------------------------------------------------
def init_params(key, hidden_dim, quantum_dim):
    H, Qd = hidden_dim, quantum_dim
    keys = jax.random.split(key, 20)
    n = lambda k, shape, s=0.02: jax.random.normal(k, shape, jnp.float32) * s
    # weights stored as [in, out] (i.e. PyTorch W.T), biases as [1, out]
    return {
        "ln1_w": 1.0 + n(keys[8], (1, H), 0.05),
        "ln1_b": n(keys[9], (1, H), 0.05),
        "wq": n(keys[0], (H, H)),   "bq": n(keys[10], (1, H), 0.01),
        "wk": n(keys[1], (H, H)),   "bk": n(keys[11], (1, H), 0.01),
        "wv": n(keys[2], (H, H)),   "bv": n(keys[12], (1, H), 0.01),
        "wqp": n(keys[3], (H, Qd)), "bqp": n(keys[13], (1, Qd), 0.01),
        "wqo": n(keys[4], (Qd, H)), "bqo": n(keys[14], (1, H), 0.01),
        "wo": n(keys[5], (H, H)),   "bo": n(keys[15], (1, H), 0.01),
        "ln2_w": 1.0 + n(keys[16], (1, H), 0.05),
        "ln2_b": n(keys[17], (1, H), 0.05),
        "w1": n(keys[6], (H, 4 * H)), "b1": n(keys[18], (1, 4 * H), 0.01),
        "w2": n(keys[7], (4 * H, H)), "b2": n(keys[19], (1, H), 0.01),
    }


if __name__ == "__main__":
    B, S, H = 2, 8, 32
    NUM_HEADS = 4
    QUANTUM_DIM = 16

    key = jax.random.PRNGKey(0)
    k_x, k_p = jax.random.split(key)
    x = jax.random.normal(k_x, (B, S, H), jnp.float32)
    params = init_params(k_p, H, QUANTUM_DIM)

    # no mask
    out = quantum_transformer_layer(x, params, NUM_HEADS, attention_mask=None)
    out = jax.block_until_ready(out)
    ref = reference(x, params, NUM_HEADS, attention_mask=None)
    assert out.shape == (B, S, H)
    assert jnp.allclose(out, ref, atol=1e-2, rtol=1e-2), "mismatch (no mask)"

    # with a padding mask (last two keys of batch 1 masked out)
    amask = jnp.ones((B, S), jnp.float32).at[1, -2:].set(0.0)
    out_m = quantum_transformer_layer(x, params, NUM_HEADS, attention_mask=amask)
    out_m = jax.block_until_ready(out_m)
    ref_m = reference(x, params, NUM_HEADS, attention_mask=amask)
    assert jnp.allclose(out_m, ref_m, atol=1e-2, rtol=1e-2), "mismatch (mask)"

    print("KERNEL_OK")
</pallas_src>

<mosaic_0001>
module attributes {stable_mosaic.version = 11 : i64} {
  func.func @_proj_kernel(%arg0: i32, %arg1: i32, %arg2: memref<1x8x32xf32, #tpu.memory_space<vmem>>, %arg3: memref<1x32xf32, #tpu.memory_space<vmem>>, %arg4: memref<1x32xf32, #tpu.memory_space<vmem>>, %arg5: memref<32x32xbf16, #tpu.memory_space<vmem>>, %arg6: memref<1x32xf32, #tpu.memory_space<vmem>>, %arg7: memref<32x32xbf16, #tpu.memory_space<vmem>>, %arg8: memref<1x32xf32, #tpu.memory_space<vmem>>, %arg9: memref<32x32xbf16, #tpu.memory_space<vmem>>, %arg10: memref<1x32xf32, #tpu.memory_space<vmem>>, %arg11: memref<32x16xbf16, #tpu.memory_space<vmem>>, %arg12: memref<1x16xf32, #tpu.memory_space<vmem>>, %arg13: memref<16x32xbf16, #tpu.memory_space<vmem>>, %arg14: memref<1x4x8x8xbf16, #tpu.memory_space<vmem>>, %arg15: memref<1x4x8x8xbf16, #tpu.memory_space<vmem>>, %arg16: memref<1x4x8x8xbf16, #tpu.memory_space<vmem>>, %arg17: memref<1x8x32xf32, #tpu.memory_space<vmem>>) attributes {dimension_semantics = [#tpu.dimension_semantics<parallel>, #tpu.dimension_semantics<parallel>], iteration_bounds = array<i64: 2, 1>, scalar_prefetch = 0 : i64, scratch_operands = 0 : i64, tpu.core_type = #tpu.core_type<tc>, window_params = [{transform_indices = @transform_0, window_bounds = array<i64: 1, 8, 32>}, {pipeline_mode = #tpu.pipeline_mode<synchronous>, transform_indices = @transform_1, window_bounds = array<i64: 1, 32>}, {pipeline_mode = #tpu.pipeline_mode<synchronous>, transform_indices = @transform_2, window_bounds = array<i64: 1, 32>}, {pipeline_mode = #tpu.pipeline_mode<synchronous>, transform_indices = @transform_3, window_bounds = array<i64: 32, 32>}, {pipeline_mode = #tpu.pipeline_mode<synchronous>, transform_indices = @transform_4, window_bounds = array<i64: 1, 32>}, {pipeline_mode = #tpu.pipeline_mode<synchronous>, transform_indices = @transform_5, window_bounds = array<i64: 32, 32>}, {pipeline_mode = #tpu.pipeline_mode<synchronous>, transform_indices = @transform_6, window_bounds = array<i64: 1, 32>}, {pipeline_mode = #tpu.pipeline_mode<synchronous>, transform_indices = @transform_7, window_bounds = array<i64: 32, 32>}, {pipeline_mode = #tpu.pipeline_mode<synchronous>, transform_indices = @transform_8, window_bounds = array<i64: 1, 32>}, {pipeline_mode = #tpu.pipeline_mode<synchronous>, transform_indices = @transform_9, window_bounds = array<i64: 32, 16>}, {pipeline_mode = #tpu.pipeline_mode<synchronous>, transform_indices = @transform_10, window_bounds = array<i64: 1, 16>}, {pipeline_mode = #tpu.pipeline_mode<synchronous>, transform_indices = @transform_11, window_bounds = array<i64: 16, 32>}, {transform_indices = @transform_12, window_bounds = array<i64: 1, 4, 8, 8>}, {transform_indices = @transform_13, window_bounds = array<i64: 1, 4, 8, 8>}, {transform_indices = @transform_14, window_bounds = array<i64: 1, 4, 8, 8>}, {transform_indices = @transform_15, window_bounds = array<i64: 1, 8, 32>}]} {
    %c0 = arith.constant 0 : index
    %c0_0 = arith.constant 0 : index
    %c0_1 = arith.constant 0 : index
    %0 = vector.load %arg2[%c0, %c0_0, %c0_1] : memref<1x8x32xf32, #tpu.memory_space<vmem>>, vector<1x8x32xf32>
    %1 = vector.shape_cast %0 : vector<1x8x32xf32> to vector<8x32xf32>
    %cst = arith.constant dense<0.000000e+00> : vector<8xf32>
    %2 = vector.multi_reduction <add>, %1, %cst [1] : vector<8x32xf32> to vector<8xf32>
    %3 = vector.shape_cast %2 : vector<8xf32> to vector<8x1xf32>
    %cst_2 = arith.constant 3.200000e+01 : f32
    %4 = vector.broadcast %cst_2 : f32 to vector<8x1xf32>
    %5 = arith.divf %3, %4 : vector<8x1xf32>
    %6 = vector.broadcast %5 : vector<8x1xf32> to vector<8x32xf32>
    %7 = arith.subf %1, %6 : vector<8x32xf32>
    %8 = arith.mulf %7, %7 : vector<8x32xf32>
    %cst_3 = arith.constant dense<0.000000e+00> : vector<8xf32>
    %9 = vector.multi_reduction <add>, %8, %cst_3 [1] : vector<8x32xf32> to vector<8xf32>
    %10 = vector.shape_cast %9 : vector<8xf32> to vector<8x1xf32>
    %cst_4 = arith.constant 3.200000e+01 : f32
    %11 = vector.broadcast %cst_4 : f32 to vector<8x1xf32>
    %12 = arith.divf %10, %11 : vector<8x1xf32>
    %13 = vector.broadcast %5 : vector<8x1xf32> to vector<8x32xf32>
    %14 = arith.subf %1, %13 : vector<8x32xf32>
    %cst_5 = arith.constant 9.99999974E-6 : f32
    %15 = vector.broadcast %cst_5 : f32 to vector<8x1xf32>
    %16 = arith.addf %12, %15 : vector<8x1xf32>
    %17 = math.rsqrt %16 : vector<8x1xf32>
    %18 = vector.broadcast %17 : vector<8x1xf32> to vector<8x32xf32>
    %19 = arith.mulf %14, %18 : vector<8x32xf32>
    %c0_6 = arith.constant 0 : index
    %c0_7 = arith.constant 0 : index
    %20 = vector.load %arg3[%c0_6, %c0_7] : memref<1x32xf32, #tpu.memory_space<vmem>>, vector<1x32xf32>
    %21 = vector.shape_cast %20 : vector<1x32xf32> to vector<32xf32>
    %22 = vector.shape_cast %21 : vector<32xf32> to vector<1x32xf32>
    %23 = vector.broadcast %22 : vector<1x32xf32> to vector<8x32xf32>
    %24 = arith.mulf %19, %23 : vector<8x32xf32>
    %c0_8 = arith.constant 0 : index
    %c0_9 = arith.constant 0 : index
    %25 = vector.load %arg4[%c0_8, %c0_9] : memref<1x32xf32, #tpu.memory_space<vmem>>, vector<1x32xf32>
    %26 = vector.shape_cast %25 : vector<1x32xf32> to vector<32xf32>
    %27 = vector.shape_cast %26 : vector<32xf32> to vector<1x32xf32>
    %28 = vector.broadcast %27 : vector<1x32xf32> to vector<8x32xf32>
    %29 = arith.addf %24, %28 : vector<8x32xf32>
    %30 = arith.truncf %29 : vector<8x32xf32> to vector<8x32xbf16>
    %c0_10 = arith.constant 0 : index
    %c0_11 = arith.constant 0 : index
    %31 = vector.load %arg11[%c0_10, %c0_11] : memref<32x16xbf16, #tpu.memory_space<vmem>>, vector<32x16xbf16>
    %cst_12 = arith.constant dense<0.000000e+00> : vector<8x16xf32>
    %32 = tpu.matmul %30, %31, %cst_12 {dimension_numbers = #tpu.dot_dimension_numbers<[1], [0], [0], [1], [0, 0, 1, 1], [], []>} : vector<8x32xbf16>, vector<32x16xbf16>, vector<8x16xf32> -> vector<8x16xf32>
    %c0_13 = arith.constant 0 : index
    %c0_14 = arith.constant 0 : index
    %33 = vector.load %arg12[%c0_13, %c0_14] : memref<1x16xf32, #tpu.memory_space<vmem>>, vector<1x16xf32>
    %34 = vector.shape_cast %33 : vector<1x16xf32> to vector<16xf32>
    %35 = vector.shape_cast %34 : vector<16xf32> to vector<1x16xf32>
    %36 = vector.broadcast %35 : vector<1x16xf32> to vector<8x16xf32>
    %37 = arith.addf %32, %36 : vector<8x16xf32>
    %38 = math.tanh %37 : vector<8x16xf32>
    %39 = arith.truncf %38 : vector<8x16xf32> to vector<8x16xbf16>
    %c0_15 = arith.constant 0 : index
    %c0_16 = arith.constant 0 : index
    %40 = vector.load %arg13[%c0_15, %c0_16] : memref<16x32xbf16, #tpu.memory_space<vmem>>, vector<16x32xbf16>
    %cst_17 = arith.constant dense<0.000000e+00> : vector<8x32xf32>
    %41 = tpu.matmul %39, %40, %cst_17 {dimension_numbers = #tpu.dot_dimension_numbers<[1], [0], [0], [1], [0, 0, 1, 1], [], []>} : vector<8x16xbf16>, vector<16x32xbf16>, vector<8x32xf32> -> vector<8x32xf32>
    %c0_18 = arith.constant 0 : index
    %c0_19 = arith.constant 0 : index
    %c0_20 = arith.constant 0 : index
    %42 = vector.load %arg17[%c0_18, %c0_19, %c0_20] : memref<1x8x32xf32, #tpu.memory_space<vmem>>, vector<1x8x32xf32>
    %43 = vector.shape_cast %42 : vector<1x8x32xf32> to vector<8x32xf32>
    %44 = vector.shape_cast %41 : vector<8x32xf32> to vector<1x8x32xf32>
    tpu.vector_store %arg17[%c0_18, %c0_19, %c0_20], %44 {strides = array<i32>} : memref<1x8x32xf32, #tpu.memory_space<vmem>>, vector<1x8x32xf32>,
    %c0_21 = arith.constant 0 : index
    %c0_22 = arith.constant 0 : index
    %45 = vector.load %arg5[%c0_21, %c0_22] : memref<32x32xbf16, #tpu.memory_space<vmem>>, vector<32x32xbf16>
    %cst_23 = arith.constant dense<0.000000e+00> : vector<8x32xf32>
    %46 = tpu.matmul %30, %45, %cst_23 {dimension_numbers = #tpu.dot_dimension_numbers<[1], [0], [0], [1], [0, 0, 1, 1], [], []>} : vector<8x32xbf16>, vector<32x32xbf16>, vector<8x32xf32> -> vector<8x32xf32>
    %c0_24 = arith.constant 0 : index
    %c0_25 = arith.constant 0 : index
    %47 = vector.load %arg6[%c0_24, %c0_25] : memref<1x32xf32, #tpu.memory_space<vmem>>, vector<1x32xf32>
    %48 = vector.shape_cast %47 : vector<1x32xf32> to vector<32xf32>
    %49 = vector.shape_cast %48 : vector<32xf32> to vector<1x32xf32>
    %50 = vector.broadcast %49 : vector<1x32xf32> to vector<8x32xf32>
    %51 = arith.addf %46, %50 : vector<8x32xf32>
    %cst_26 = arith.constant 0.353553385 : f32
    %52 = vector.broadcast %cst_26 : f32 to vector<8x32xf32>
    %53 = arith.mulf %51, %52 : vector<8x32xf32>
    %c0_27 = arith.constant 0 : index
    %c0_28 = arith.constant 0 : index
    %54 = vector.load %arg7[%c0_27, %c0_28] : memref<32x32xbf16, #tpu.memory_space<vmem>>, vector<32x32xbf16>
    %cst_29 = arith.constant dense<0.000000e+00> : vector<8x32xf32>
    %55 = tpu.matmul %30, %54, %cst_29 {dimension_numbers = #tpu.dot_dimension_numbers<[1], [0], [0], [1], [0, 0, 1, 1], [], []>} : vector<8x32xbf16>, vector<32x32xbf16>, vector<8x32xf32> -> vector<8x32xf32>
    %c0_30 = arith.constant 0 : index
    %c0_31 = arith.constant 0 : index
    %56 = vector.load %arg8[%c0_30, %c0_31] : memref<1x32xf32, #tpu.memory_space<vmem>>, vector<1x32xf32>
    %57 = vector.shape_cast %56 : vector<1x32xf32> to vector<32xf32>
    %58 = vector.shape_cast %57 : vector<32xf32> to vector<1x32xf32>
    %59 = vector.broadcast %58 : vector<1x32xf32> to vector<8x32xf32>
    %60 = arith.addf %55, %59 : vector<8x32xf32>
    %c0_32 = arith.constant 0 : index
    %c0_33 = arith.constant 0 : index
    %61 = vector.load %arg9[%c0_32, %c0_33] : memref<32x32xbf16, #tpu.memory_space<vmem>>, vector<32x32xbf16>
    %cst_34 = arith.constant dense<0.000000e+00> : vector<8x32xf32>
    %62 = tpu.matmul %30, %61, %cst_34 {dimension_numbers = #tpu.dot_dimension_numbers<[1], [0], [0], [1], [0, 0, 1, 1], [], []>} : vector<8x32xbf16>, vector<32x32xbf16>, vector<8x32xf32> -> vector<8x32xf32>
    %c0_35 = arith.constant 0 : index
    %c0_36 = arith.constant 0 : index
    %63 = vector.load %arg10[%c0_35, %c0_36] : memref<1x32xf32, #tpu.memory_space<vmem>>, vector<1x32xf32>
    %64 = vector.shape_cast %63 : vector<1x32xf32> to vector<32xf32>
    %65 = vector.shape_cast %64 : vector<32xf32> to vector<1x32xf32>
    %66 = vector.broadcast %65 : vector<1x32xf32> to vector<8x32xf32>
    %67 = arith.addf %62, %66 : vector<8x32xf32>
    %68 = vector.extract_strided_slice %53 {offsets = [0, 0], sizes = [8, 8], strides = [1, 1]} : vector<8x32xf32> to vector<8x8xf32>
    %69 = arith.truncf %68 : vector<8x8xf32> to vector<8x8xbf16>
    %c0_37 = arith.constant 0 : index
    %c0_38 = arith.constant 0 : index
    %c0_39 = arith.constant 0 : index
    %c0_40 = arith.constant 0 : index
    %70 = vector.load %arg14[%c0_37, %c0_38, %c0_39, %c0_40] : memref<1x4x8x8xbf16, #tpu.memory_space<vmem>>, vector<1x1x8x8xbf16>
    %71 = vector.shape_cast %70 : vector<1x1x8x8xbf16> to vector<8x8xbf16>
    %72 = vector.shape_cast %69 : vector<8x8xbf16> to vector<1x1x8x8xbf16>
    tpu.vector_store %arg14[%c0_37, %c0_38, %c0_39, %c0_40], %72 {strides = array<i32>} : memref<1x4x8x8xbf16, #tpu.memory_space<vmem>>, vector<1x1x8x8xbf16>,
    %73 = vector.extract_strided_slice %60 {offsets = [0, 0], sizes = [8, 8], strides = [1, 1]} : vector<8x32xf32> to vector<8x8xf32>
    %74 = arith.truncf %73 : vector<8x8xf32> to vector<8x8xbf16>
    %c0_41 = arith.constant 0 : index
    %c0_42 = arith.constant 0 : index
    %c0_43 = arith.constant 0 : index
    %c0_44 = arith.constant 0 : index
    %75 = vector.load %arg15[%c0_41, %c0_42, %c0_43, %c0_44] : memref<1x4x8x8xbf16, #tpu.memory_space<vmem>>, vector<1x1x8x8xbf16>
    %76 = vector.shape_cast %75 : vector<1x1x8x8xbf16> to vector<8x8xbf16>
    %77 = vector.shape_cast %74 : vector<8x8xbf16> to vector<1x1x8x8xbf16>
    tpu.vector_store %arg15[%c0_41, %c0_42, %c0_43, %c0_44], %77 {strides = array<i32>} : memref<1x4x8x8xbf16, #tpu.memory_space<vmem>>, vector<1x1x8x8xbf16>,
    %78 = vector.extract_strided_slice %67 {offsets = [0, 0], sizes = [8, 8], strides = [1, 1]} : vector<8x32xf32> to vector<8x8xf32>
    %79 = arith.truncf %78 : vector<8x8xf32> to vector<8x8xbf16>
    %c0_45 = arith.constant 0 : index
    %c0_46 = arith.constant 0 : index
    %c0_47 = arith.constant 0 : index
    %c0_48 = arith.constant 0 : index
    %80 = vector.load %arg16[%c0_45, %c0_46, %c0_47, %c0_48] : memref<1x4x8x8xbf16, #tpu.memory_space<vmem>>, vector<1x1x8x8xbf16>
    %81 = vector.shape_cast %80 : vector<1x1x8x8xbf16> to vector<8x8xbf16>
    %82 = vector.shape_cast %79 : vector<8x8xbf16> to vector<1x1x8x8xbf16>
    tpu.vector_store %arg16[%c0_45, %c0_46, %c0_47, %c0_48], %82 {strides = array<i32>} : memref<1x4x8x8xbf16, #tpu.memory_space<vmem>>, vector<1x1x8x8xbf16>,
    %83 = vector.extract_strided_slice %53 {offsets = [0, 8], sizes = [8, 8], strides = [1, 1]} : vector<8x32xf32> to vector<8x8xf32>
    %84 = arith.truncf %83 : vector<8x8xf32> to vector<8x8xbf16>
    %c0_49 = arith.constant 0 : index
    %c1 = arith.constant 1 : index
    %c0_50 = arith.constant 0 : index
    %c0_51 = arith.constant 0 : index
    %85 = vector.load %arg14[%c0_49, %c1, %c0_50, %c0_51] : memref<1x4x8x8xbf16, #tpu.memory_space<vmem>>, vector<1x1x8x8xbf16>
    %86 = vector.shape_cast %85 : vector<1x1x8x8xbf16> to vector<8x8xbf16>
    %87 = vector.shape_cast %84 : vector<8x8xbf16> to vector<1x1x8x8xbf16>
    tpu.vector_store %arg14[%c0_49, %c1, %c0_50, %c0_51], %87 {strides = array<i32>} : memref<1x4x8x8xbf16, #tpu.memory_space<vmem>>, vector<1x1x8x8xbf16>,
    %88 = vector.extract_strided_slice %60 {offsets = [0, 8], sizes = [8, 8], strides = [1, 1]} : vector<8x32xf32> to vector<8x8xf32>
    %89 = arith.truncf %88 : vector<8x8xf32> to vector<8x8xbf16>
    %c0_52 = arith.constant 0 : index
    %c1_53 = arith.constant 1 : index
    %c0_54 = arith.constant 0 : index
    %c0_55 = arith.constant 0 : index
    %90 = vector.load %arg15[%c0_52, %c1_53, %c0_54, %c0_55] : memref<1x4x8x8xbf16, #tpu.memory_space<vmem>>, vector<1x1x8x8xbf16>
    %91 = vector.shape_cast %90 : vector<1x1x8x8xbf16> to vector<8x8xbf16>
    %92 = vector.shape_cast %89 : vector<8x8xbf16> to vector<1x1x8x8xbf16>
    tpu.vector_store %arg15[%c0_52, %c1_53, %c0_54, %c0_55], %92 {strides = array<i32>} : memref<1x4x8x8xbf16, #tpu.memory_space<vmem>>, vector<1x1x8x8xbf16>,
    %93 = vector.extract_strided_slice %67 {offsets = [0, 8], sizes = [8, 8], strides = [1, 1]} : vector<8x32xf32> to vector<8x8xf32>
    %94 = arith.truncf %93 : vector<8x8xf32> to vector<8x8xbf16>
    %c0_56 = arith.constant 0 : index
    %c1_57 = arith.constant 1 : index
    %c0_58 = arith.constant 0 : index
    %c0_59 = arith.constant 0 : index
    %95 = vector.load %arg16[%c0_56, %c1_57, %c0_58, %c0_59] : memref<1x4x8x8xbf16, #tpu.memory_space<vmem>>, vector<1x1x8x8xbf16>
    %96 = vector.shape_cast %95 : vector<1x1x8x8xbf16> to vector<8x8xbf16>
    %97 = vector.shape_cast %94 : vector<8x8xbf16> to vector<1x1x8x8xbf16>
    tpu.vector_store %arg16[%c0_56, %c1_57, %c0_58, %c0_59], %97 {strides = array<i32>} : memref<1x4x8x8xbf16, #tpu.memory_space<vmem>>, vector<1x1x8x8xbf16>,
    %98 = vector.extract_strided_slice %53 {offsets = [0, 16], sizes = [8, 8], strides = [1, 1]} : vector<8x32xf32> to vector<8x8xf32>
    %99 = arith.truncf %98 : vector<8x8xf32> to vector<8x8xbf16>
    %c0_60 = arith.constant 0 : index
    %c2 = arith.constant 2 : index
    %c0_61 = arith.constant 0 : index
    %c0_62 = arith.constant 0 : index
    %100 = vector.load %arg14[%c0_60, %c2, %c0_61, %c0_62] : memref<1x4x8x8xbf16, #tpu.memory_space<vmem>>, vector<1x1x8x8xbf16>
    %101 = vector.shape_cast %100 : vector<1x1x8x8xbf16> to vector<8x8xbf16>
    %102 = vector.shape_cast %99 : vector<8x8xbf16> to vector<1x1x8x8xbf16>
    tpu.vector_store %arg14[%c0_60, %c2, %c0_61, %c0_62], %102 {strides = array<i32>} : memref<1x4x8x8xbf16, #tpu.memory_space<vmem>>, vector<1x1x8x8xbf16>,
    %103 = vector.extract_strided_slice %60 {offsets = [0, 16], sizes = [8, 8], strides = [1, 1]} : vector<8x32xf32> to vector<8x8xf32>
    %104 = arith.truncf %103 : vector<8x8xf32> to vector<8x8xbf16>
    %c0_63 = arith.constant 0 : index
    %c2_64 = arith.constant 2 : index
    %c0_65 = arith.constant 0 : index
    %c0_66 = arith.constant 0 : index
    %105 = vector.load %arg15[%c0_63, %c2_64, %c0_65, %c0_66] : memref<1x4x8x8xbf16, #tpu.memory_space<vmem>>, vector<1x1x8x8xbf16>
    %106 = vector.shape_cast %105 : vector<1x1x8x8xbf16> to vector<8x8xbf16>
    %107 = vector.shape_cast %104 : vector<8x8xbf16> to vector<1x1x8x8xbf16>
    tpu.vector_store %arg15[%c0_63, %c2_64, %c0_65, %c0_66], %107 {strides = array<i32>} : memref<1x4x8x8xbf16, #tpu.memory_space<vmem>>, vector<1x1x8x8xbf16>,
    %108 = vector.extract_strided_slice %67 {offsets = [0, 16], sizes = [8, 8], strides = [1, 1]} : vector<8x32xf32> to vector<8x8xf32>
    %109 = arith.truncf %108 : vector<8x8xf32> to vector<8x8xbf16>
    %c0_67 = arith.constant 0 : index
    %c2_68 = arith.constant 2 : index
    %c0_69 = arith.constant 0 : index
    %c0_70 = arith.constant 0 : index
    %110 = vector.load %arg16[%c0_67, %c2_68, %c0_69, %c0_70] : memref<1x4x8x8xbf16, #tpu.memory_space<vmem>>, vector<1x1x8x8xbf16>
    %111 = vector.shape_cast %110 : vector<1x1x8x8xbf16> to vector<8x8xbf16>
    %112 = vector.shape_cast %109 : vector<8x8xbf16> to vector<1x1x8x8xbf16>
    tpu.vector_store %arg16[%c0_67, %c2_68, %c0_69, %c0_70], %112 {strides = array<i32>} : memref<1x4x8x8xbf16, #tpu.memory_space<vmem>>, vector<1x1x8x8xbf16>,
    %113 = vector.extract_strided_slice %53 {offsets = [0, 24], sizes = [8, 8], strides = [1, 1]} : vector<8x32xf32> to vector<8x8xf32>
    %114 = arith.truncf %113 : vector<8x8xf32> to vector<8x8xbf16>
    %c0_71 = arith.constant 0 : index
    %c3 = arith.constant 3 : index
    %c0_72 = arith.constant 0 : index
    %c0_73 = arith.constant 0 : index
    %115 = vector.load %arg14[%c0_71, %c3, %c0_72, %c0_73] : memref<1x4x8x8xbf16, #tpu.memory_space<vmem>>, vector<1x1x8x8xbf16>
    %116 = vector.shape_cast %115 : vector<1x1x8x8xbf16> to vector<8x8xbf16>
    %117 = vector.shape_cast %114 : vector<8x8xbf16> to vector<1x1x8x8xbf16>
    tpu.vector_store %arg14[%c0_71, %c3, %c0_72, %c0_73], %117 {strides = array<i32>} : memref<1x4x8x8xbf16, #tpu.memory_space<vmem>>, vector<1x1x8x8xbf16>,
    %118 = vector.extract_strided_slice %60 {offsets = [0, 24], sizes = [8, 8], strides = [1, 1]} : vector<8x32xf32> to vector<8x8xf32>
    %119 = arith.truncf %118 : vector<8x8xf32> to vector<8x8xbf16>
    %c0_74 = arith.constant 0 : index
    %c3_75 = arith.constant 3 : index
    %c0_76 = arith.constant 0 : index
    %c0_77 = arith.constant 0 : index
    %120 = vector.load %arg15[%c0_74, %c3_75, %c0_76, %c0_77] : memref<1x4x8x8xbf16, #tpu.memory_space<vmem>>, vector<1x1x8x8xbf16>
    %121 = vector.shape_cast %120 : vector<1x1x8x8xbf16> to vector<8x8xbf16>
    %122 = vector.shape_cast %119 : vector<8x8xbf16> to vector<1x1x8x8xbf16>
    tpu.vector_store %arg15[%c0_74, %c3_75, %c0_76, %c0_77], %122 {strides = array<i32>} : memref<1x4x8x8xbf16, #tpu.memory_space<vmem>>, vector<1x1x8x8xbf16>,
    %123 = vector.extract_strided_slice %67 {offsets = [0, 24], sizes = [8, 8], strides = [1, 1]} : vector<8x32xf32> to vector<8x8xf32>
    %124 = arith.truncf %123 : vector<8x8xf32> to vector<8x8xbf16>
    %c0_78 = arith.constant 0 : index
    %c3_79 = arith.constant 3 : index
    %c0_80 = arith.constant 0 : index
    %c0_81 = arith.constant 0 : index
    %125 = vector.load %arg16[%c0_78, %c3_79, %c0_80, %c0_81] : memref<1x4x8x8xbf16, #tpu.memory_space<vmem>>, vector<1x1x8x8xbf16>
    %126 = vector.shape_cast %125 : vector<1x1x8x8xbf16> to vector<8x8xbf16>
    %127 = vector.shape_cast %124 : vector<8x8xbf16> to vector<1x1x8x8xbf16>
    tpu.vector_store %arg16[%c0_78, %c3_79, %c0_80, %c0_81], %127 {strides = array<i32>} : memref<1x4x8x8xbf16, #tpu.memory_space<vmem>>, vector<1x1x8x8xbf16>,
    return
  }
  func.func @transform_0(%arg0: i32, %arg1: i32) -> (i32, i32, i32) {
    %c0_i32 = arith.constant 0 : i32
    %c0_i32_0 = arith.constant 0 : i32
    return %arg0, %arg1, %c0_i32 : i32, i32, i32
  }
  func.func @transform_1(%arg0: i32, %arg1: i32) -> (i32, i32) {
    %c0_i32 = arith.constant 0 : i32
    %c0_i32_0 = arith.constant 0 : i32
    %c0_i32_1 = arith.constant 0 : i32
    return %c0_i32, %c0_i32_0 : i32, i32
  }
  func.func @transform_2(%arg0: i32, %arg1: i32) -> (i32, i32) {
    %c0_i32 = arith.constant 0 : i32
    %c0_i32_0 = arith.constant 0 : i32
    %c0_i32_1 = arith.constant 0 : i32
    return %c0_i32, %c0_i32_0 : i32, i32
  }
  func.func @transform_3(%arg0: i32, %arg1: i32) -> (i32, i32) {
    %c0_i32 = arith.constant 0 : i32
    %c0_i32_0 = arith.constant 0 : i32
    %c0_i32_1 = arith.constant 0 : i32
    return %c0_i32, %c0_i32_0 : i32, i32
  }
  func.func @transform_4(%arg0: i32, %arg1: i32) -> (i32, i32) {
    %c0_i32 = arith.constant 0 : i32
    %c0_i32_0 = arith.constant 0 : i32
    %c0_i32_1 = arith.constant 0 : i32
    return %c0_i32, %c0_i32_0 : i32, i32
  }
  func.func @transform_5(%arg0: i32, %arg1: i32) -> (i32, i32) {
    %c0_i32 = arith.constant 0 : i32
    %c0_i32_0 = arith.constant 0 : i32
    %c0_i32_1 = arith.constant 0 : i32
    return %c0_i32, %c0_i32_0 : i32, i32
  }
  func.func @transform_6(%arg0: i32, %arg1: i32) -> (i32, i32) {
    %c0_i32 = arith.constant 0 : i32
    %c0_i32_0 = arith.constant 0 : i32
    %c0_i32_1 = arith.constant 0 : i32
    return %c0_i32, %c0_i32_0 : i32, i32
  }
  func.func @transform_7(%arg0: i32, %arg1: i32) -> (i32, i32) {
    %c0_i32 = arith.constant 0 : i32
    %c0_i32_0 = arith.constant 0 : i32
    %c0_i32_1 = arith.constant 0 : i32
    return %c0_i32, %c0_i32_0 : i32, i32
  }
  func.func @transform_8(%arg0: i32, %arg1: i32) -> (i32, i32) {
    %c0_i32 = arith.constant 0 : i32
    %c0_i32_0 = arith.constant 0 : i32
    %c0_i32_1 = arith.constant 0 : i32
    return %c0_i32, %c0_i32_0 : i32, i32
  }
  func.func @transform_9(%arg0: i32, %arg1: i32) -> (i32, i32) {
    %c0_i32 = arith.constant 0 : i32
    %c0_i32_0 = arith.constant 0 : i32
    %c0_i32_1 = arith.constant 0 : i32
    return %c0_i32, %c0_i32_0 : i32, i32
  }
  func.func @transform_10(%arg0: i32, %arg1: i32) -> (i32, i32) {
    %c0_i32 = arith.constant 0 : i32
    %c0_i32_0 = arith.constant 0 : i32
    %c0_i32_1 = arith.constant 0 : i32
    return %c0_i32, %c0_i32_0 : i32, i32
  }
  func.func @transform_11(%arg0: i32, %arg1: i32) -> (i32, i32) {
    %c0_i32 = arith.constant 0 : i32
    %c0_i32_0 = arith.constant 0 : i32
    %c0_i32_1 = arith.constant 0 : i32
    return %c0_i32, %c0_i32_0 : i32, i32
  }
  func.func @transform_12(%arg0: i32, %arg1: i32) -> (i32, i32, i32, i32) {
    %c0_i32 = arith.constant 0 : i32
    %c0_i32_0 = arith.constant 0 : i32
    %c0_i32_1 = arith.constant 0 : i32
    return %arg0, %c0_i32, %arg1, %c0_i32_0 : i32, i32, i32, i32
  }
  func.func @transform_13(%arg0: i32, %arg1: i32) -> (i32, i32, i32, i32) {
    %c0_i32 = arith.constant 0 : i32
    %c0_i32_0 = arith.constant 0 : i32
    %c0_i32_1 = arith.constant 0 : i32
    return %arg0, %c0_i32, %arg1, %c0_i32_0 : i32, i32, i32, i32
  }
  func.func @transform_14(%arg0: i32, %arg1: i32) -> (i32, i32, i32, i32) {
    %c0_i32 = arith.constant 0 : i32
    %c0_i32_0 = arith.constant 0 : i32
    %c0_i32_1 = arith.constant 0 : i32
    return %arg0, %c0_i32, %arg1, %c0_i32_0 : i32, i32, i32, i32
  }
  func.func @transform_15(%arg0: i32, %arg1: i32) -> (i32, i32, i32) {
    %c0_i32 = arith.constant 0 : i32
    %c0_i32_0 = arith.constant 0 : i32
    return %arg0, %arg1, %c0_i32 : i32, i32, i32
  }
}

</mosaic_0001>

<bundles_post_ra>
// kernel: tpu_custom_call.1
= control target key start
LH: loop header
LB: loop body
LE: loop exit
PB: predicated region body
PF: predicated region fallthrough
CT: control target
= control target key end

     0   :  { %s2381_s0 = inlined_call_operand.vmem [shape: f32[2,8,32], index: 0, kind: input, shape index: {}]   ;;  %s2382_s1 = inlined_call_operand.hbm [shape: f32[1,32], index: 1, kind: input, shape index: {}]   ;;  %s2383_s2 = inlined_call_operand.hbm [shape: f32[1,32], index: 2, kind: input, shape index: {}]   ;;  %s2384_s3 = inlined_call_operand.hbm [shape: bf16[32,32], index: 3, kind: input, shape index: {}]   ;;  %s2385_s4 = inlined_call_operand.hbm [shape: f32[1,32], index: 4, kind: input, shape index: {}]   ;;  %s2386_s5 = inlined_call_operand.hbm [shape: bf16[32,32], index: 5, kind: input, shape index: {}]   ;;  %s2387_s6 = inlined_call_operand.hbm [shape: f32[1,32], index: 6, kind: input, shape index: {}]   ;;  %s2388_s7 = inlined_call_operand.hbm [shape: bf16[32,32], index: 7, kind: input, shape index: {}]   ;;  %s2389_s8 = inlined_call_operand.hbm [shape: f32[1,32], index: 8, kind: input, shape index: {}]   ;;  %s2390_s9 = inlined_call_operand.vmem [shape: bf16[32,16], index: 9, kind: input, shape index: {}]   ;;  %s2391_s10 = inlined_call_operand.vmem [shape: f32[1,16], index: 10, kind: input, shape index: {}]   ;;  %s2392_s11 = inlined_call_operand.vmem [shape: bf16[16,32], index: 11, kind: input, shape index: {}]   ;;  %s2393_s12 = inlined_call_operand.hbm [shape: bf16[2,4,8,8], index: 12, kind: output, shape index: {0}]   ;;  %s2394_s13 = inlined_call_operand.hbm [shape: bf16[2,4,8,8], index: 13, kind: output, shape index: {1}]   ;;  %s2395_s14 = inlined_call_operand.hbm [shape: bf16[2,4,8,8], index: 14, kind: output, shape index: {2}]   ;;  %s2396_s15 = inlined_call_operand.hbm [shape: f32[2,8,32], index: 15, kind: output, shape index: {3}]  }
   0x1   :  { %2412 = sst [smem:[#allocation37_spill]] %s2381_s0 }
   0x2   :  { %2413 = sst [smem:[#allocation38_spill]] %s2382_s1 }
   0x3   :  { %2414 = sst [smem:[#allocation39_spill]] %s2383_s2 }
   0x4   :  { %2415 = sst [smem:[#allocation40_spill]] %s2384_s3 }
   0x5   :  { %2416 = sst [smem:[#allocation41_spill]] %s2385_s4 }
   0x6   :  { %2417 = sst [smem:[#allocation42_spill]] %s2386_s5 }
   0x7   :  { %2418 = sst [smem:[#allocation43_spill]] %s2387_s6 }
   0x8   :  { %2419 = sst [smem:[#allocation44_spill]] %s2395_s14 }
   0x9   :  { %2420 = sst [smem:[#allocation45_spill]] %s2396_s15 }
   0xa   :  { %21 = vsyncpa [#allocation3], 0 }
   0xb   :  { %22 = vsyncpa [#allocation6], 0 }
   0xc   :  { %23 = vsyncpa [#allocation9], 0 }
   0xd   :  { %24 = vsyncpa [#allocation12], 0 }
   0xe   :  { %25 = vsyncpa [#allocation15], 0 }
   0xf   :  { %26 = vsyncpa [#allocation4], 0 }
  0x10   :  { %28 = vsyncpa [#allocation4 + $0x1], 0 }
  0x11   :  { %29 = vsyncpa [#allocation18], 0 }
  0x12   :  { %31 = vsyncpa [#allocation18 + $0x1], 0 }
  0x13   :  { %32 = vsyncpa [#allocation21], 0 }
  0x14   :  { %34 = vsyncpa [#allocation21 + $0x1], 0  ;;  %s2072_s18 = smov 0   ;;  %s2074_s19 = smov 0  }
  0x15   :  { %s2076_s20 = smov 0   ;;  %s2078_s21 = smov 0  }
  0x16   :  { %s2080_s22 = smov 0   ;;  %s2082_s23 = smov 0  }
  0x17 LB: > { %2421 = sst [smem:[#allocation30_spill]] %s1954_s18  ;;  %s2103_s24 = sadd.s32 4294967295, %s1974_s23   ;;  %s1974_s23 = sphi %s2082_s23, %s40_s23   ;;  %s1970_s22 = sphi %s2080_s22, %s2455_s22   ;;  %s1966_s21 = sphi %s2078_s21, %s2454_s21   ;;  %s1962_s20 = sphi %s2076_s20, %s2453_s20   ;;  %s1958_s19 = sphi %s2074_s19, %s2457_s19   ;;  %s1954_s18 = sphi %s2072_s18, %s2456_s18  }
  0x18   : > { %2422 = sst [smem:[#allocation31_spill]] %s1962_s20  ;;  %s2399_s25 = sadd.s32 4294967294, %s1974_s23  }
  0x19   : > { %2423 = sst [smem:[#allocation32_spill]] %s1970_s22  ;;  %s52_s26 = sadd.s32 1, %s1970_s22 }
  0x1a   : > { %2424 = sst [smem:[#allocation33_spill]] %s1974_s23  ;;  %s320_s27 = sadd.s32 1, %s1962_s20 }
  0x1b   : > { %p54_p0 = scmp.ge.s32.totalorder %s52_s26, 2  ;;  %p330_p1 = scmp.ne.s32.totalorder %s1962_s20, %s1958_s19 }
  0x1c   : > { %p331_p2 = scmp.eq.s32.totalorder %s2103_s24, 1  ;;  %p336_p3 = scmp.ne.s32.totalorder %s1958_s19, %s1954_s18 }
  0x1d   : > { %s2459_s26 = smov (%p54_p0, %s52_s26), 0  ;;  %p337_p5 = scmp.eq.s32.totalorder %s2399_s25, 1 }
  0x1e   : > { %2425 = sst [smem:[#allocation34_spill]] %s2459_s26  ;;  %p2115_p4 = por %p331_p2, %p330_p1 }
  0x1f   : > { %s315_s29 = ssub.s32 %s1970_s22, %s2459_s26  ;;  %p1274_p6 = scmp.ge.s32.totalorder %s1974_s23, 1 }
  0x20   : > { %p318_p7 = scmp.eq.s32.totalorder %s315_s29, 0  ;;  %p2124_p8 = por %p337_p5, %p336_p3 }
  0x21   : > { %p428_p9 = scmp.lt.s32.totalorder %s1974_s23, 3  ;;  %p1451_p11 = scmp.eq.s32.totalorder %s2103_s24, 0 }
  0x22   : > { %s2427_s30 = scalar_select %p2124_p8, 1, 0 }
  0x23   : > { %s2130_s16 = scalar_select %p318_p7, %s1962_s20, %s320_s27  }
  0x24   : > { %2428 = sst [smem:[#allocation35_spill]] %s2427_s30  ;;  %p2132_p10 = pnand %p1274_p6, %p428_p9 }
  0x25   : > { %2429 = sst [smem:[#allocation36_spill]] %s2130_s16  ;;  %s1976_s29 = smov [#allocation5]  }
  0x26   : > { %s2431_s2 = sld [smem:[#allocation39_spill]]  ;;  %p1413_p12 = pneg %p2132_p10 }
  0x27   : > { %s454_s26 = sshll.u32 %s1976_s29, 4  ;;  %s2432_s4 = sld [smem:[#allocation41_spill]]  ;;  %s455_s26 = int_to_ptr.vmem [resolvable:$true] %s454_s26 }
  0x28   : > { %p2147_p13 = pnand %p1451_p11, %p1413_p12  ;;  %s1977_s14 = smov [#allocation8]  }
  0x29   : > { %s480_s18 = sshll.u32 %s1977_s14, 4  ;;  %s2434_s6 = sld [smem:[#allocation43_spill]]  ;;  %s481_s18 = int_to_ptr.vmem [resolvable:$true] %s480_s18 }
  0x2a   : > { %s1978_s30 = smov [#allocation11]   ;;  %s2435_s1 = sld [smem:[#allocation38_spill]] }
  0x2b   : > { %s2436_s3 = sld [smem:[#allocation40_spill]]  ;;  %s1983_s15 = smov [#allocation10]  }
  0x2c   : > { %s452_s25 = sshll.u32 %s2431_s2, 4  ;;  %s2437_s5 = sld [smem:[#allocation42_spill]]  ;;  %s453_s25 = int_to_ptr.hbm [resolvable:$true] %s452_s25 }
  0x2d   : > { %s478_s27 = sshll.u32 %s2432_s4, 4  ;;  %s506_s4 = sshll.u32 %s1978_s30, 4  ;;  %s479_s27 = int_to_ptr.hbm [resolvable:$true] %s478_s27  ;;  %s507_s4 = int_to_ptr.vmem [resolvable:$true] %s506_s4 }
  0x2e   : > { %1419 = dma.hbm_to_vmem [thread:$0]  (!%p2147_p13), %s453_s25, 16, %s455_s26, [#allocation6]  }
  0x2f   : > { %s504_s22 = sshll.u32 %s2434_s6, 4  ;;  %s1979_s25 = smov [#allocation2]   ;;  %s505_s22 = int_to_ptr.hbm [resolvable:$true] %s504_s22 }
  0x30   : > { %1425 = dma.hbm_to_vmem [thread:$0]  (!%p2147_p13), %s479_s27, 16, %s481_s18, [#allocation9]  }
  0x31   : > { %1431 = dma.hbm_to_vmem [thread:$0]  (!%p2147_p13), %s505_s22, 16, %s507_s4, [#allocation12]  }
  0x32   : > { %s440_s14 = sshll.u32 %s2435_s1, 4  ;;  %s442_s26 = sshll.u32 %s1979_s25, 4  ;;  %s441_s14 = int_to_ptr.hbm [resolvable:$true] %s440_s14  ;;  %s443_s26 = int_to_ptr.vmem [resolvable:$true] %s442_s26 }
  0x33   : > { %s463_s27 = sshll.u32 %s2436_s3, 4  ;;  %s1980_s18 = smov [#allocation7]   ;;  %s464_s27 = int_to_ptr.hbm [resolvable:$true] %s463_s27 }
  0x34   : > { %1416 = dma.hbm_to_vmem [thread:$0]  (!%p2147_p13), %s441_s14, 16, %s443_s26, [#allocation3]  }
  0x35   : > { %s465_s29 = sshll.u32 %s1980_s18, 4  ;;  %s1981_s4 = smov 64   ;;  %s466_s29 = int_to_ptr.vmem [resolvable:$true] %s465_s29 }
  0x36   : > { %s1982_s22 = smov 4   ;;  %s489_s30 = sshll.u32 %s2437_s5, 4  ;;  %s490_s30 = int_to_ptr.hbm [resolvable:$true] %s489_s30 }
  0x37   : > { %1422 = dma.hbm_to_vmem [thread:$0]  (!%p2147_p13), %s464_s27, 256, %s466_s29, [#allocation6], %s1981_s4, %s1981_s4, %s1982_s22  }
  0x38   : > { %s491_s25 = sshll.u32 %s1983_s15, 4  ;;  %s515_s26 = sshll.u32 %s2388_s7, 4  ;;  %s492_s25 = int_to_ptr.vmem [resolvable:$true] %s491_s25  ;;  %s516_s26 = int_to_ptr.hbm [resolvable:$true] %s515_s26 }
  0x39   : > { %1428 = dma.hbm_to_vmem [thread:$0]  (!%p2147_p13), %s490_s30, 256, %s492_s25, [#allocation9], %s1981_s4, %s1981_s4, %s1982_s22  }
  0x3a   : > { %s1984_s18 = smov [#allocation13]   ;;  %s530_s29 = sshll.u32 %s2389_s8, 4  ;;  %s531_s29 = int_to_ptr.hbm [resolvable:$true] %s530_s29 }
  0x3b   : > { %s517_s1 = sshll.u32 %s1984_s18, 4  ;;  %s1985_s20 = smov [#allocation14]   ;;  %s518_s1 = int_to_ptr.vmem [resolvable:$true] %s517_s1 }
  0x3c   : > { %1434 = dma.hbm_to_vmem [thread:$0]  (!%p2147_p13), %s516_s26, 256, %s518_s1, [#allocation12], %s1981_s4, %s1981_s4, %s1982_s22  }
  0x3d   : > { %s532_s23 = sshll.u32 %s1985_s20, 4  ;;  %564 = sbr.rel (%p2132_p10) target bundleno = 781 (0x30d), region = 68  ;;  %s533_s23 = int_to_ptr.vmem [resolvable:$true] %s532_s23 }
  0x3e   : > { %1437 = dma.hbm_to_vmem [thread:$0]  (!%p2147_p13), %s531_s29, 16, %s533_s23, [#allocation15]  }
  0x42   : > { %1921 = dma.done.wait (%p1451_p11), [#allocation3], 16  }
  0x43   : > { %1923 = vsyncadd (%p1451_p11), [#allocation3], 4294967280 }
  0x44   : > { %1925 = dma.done.wait (%p1451_p11), [#allocation6], 272  }
  0x45   : > { %1927 = vsyncadd (%p1451_p11), [#allocation6], 4294967024 }
  0x46   : > { %1929 = dma.done.wait (%p1451_p11), [#allocation9], 272  }
  0x47   : > { %1931 = vsyncadd (%p1451_p11), [#allocation9], 4294967024 }
  0x48   : > { %1933 = dma.done.wait (%p1451_p11), [#allocation12], 272  }
  0x49   : > { %1935 = vsyncadd (%p1451_p11), [#allocation12], 4294967024 }
  0x4a   : > { %1937 = dma.done.wait (%p1451_p11), [#allocation15], 16  }
  0x4b   : > { %1939 = vsyncadd (%p1451_p11), [#allocation15], 4294967280  ;;  %p665_p0 = scmp.lt.s32.totalorder %s1966_s21, 1  ;;  %s2438_s0 = sld [smem:[#allocation37_spill]]  ;;  %vm674_vm0 = vcmask 261120   ;;  %v1986_v2 = vmov 32.0  }
  0x4c   : > { %1538 = vrcp.f32 %v1986_v2  ;;  %v1362_v14 = vld [vmem:[%s2390_s9 + $0x8] sm:$0xff]  ;;  %v1367_v16 = vld [vmem:[#allocation10 + $0x8] sm:$0xff]  ;;  %v1366_v19 = vld [vmem:[#allocation10] sm:$0xff]  ;;  %s2230_s27 = sand.u32 1, %s1958_s19   ;;  %vm880_vm5 = vcmask 60416   ;;  %vm761_vm6 = vcmask 130048  }
  0x4d   : > { %s666_s1 = scalar_select %p665_p0, %s1966_s21, 1  ;;  %v1365_v15 = vld [vmem:[#allocation7 + $0x8] sm:$0xff]  ;;  %744 = vmatpush.bf16.msra.mxu0 %v1362_v14  ;;  %v1361_v17 = vld [vmem:[%s2390_s9] sm:$0xff]  ;;  %839 = vmatpush.bf16.msra.mxu3 %v1367_v16  ;;  %v1535_v42 = vld [vmem:[#allocation8] ss:$0 sm:$0xff] }
  0x4e   : > { %805 = vmatpush.bf16.msra.mxu2 %v1365_v15  ;;  %v1364_v18 = vld [vmem:[#allocation7] sm:$0xff]  ;;  %v1532_v29 = vld [vmem:[#allocation2] ss:$0 sm:$0xff]  ;;  %v1533_v32 = vld [vmem:[#allocation5] ss:$0 sm:$0xff]  ;;  %s2233_s29 = sshll.u32 %s2230_s27, 4 }
  0x4f   : > { %s1297_s3 = sshll.u32 %s666_s1, 3  ;;  %v1363_v36 = vld [vmem:[%s2392_s11] sm:$0xff]  ;;  %v1369_v37 = vld [vmem:[#allocation13 + $0x8] sm:$0xff]  ;;  %v1368_v38 = vld [vmem:[#allocation13] sm:$0xff]  ;;  %s2236_s20 = scalar_lea.vmem [#allocation17], %s2233_s29 }
  0x50   : > { %772 = vmatpush.bf16.msra.mxu1 %v1363_v36  ;;  %v1534_v39 = vld [vmem:[%s2391_s10] ss:$0 sm:$0xff]  ;;  %v1536_v43 = vld [vmem:[#allocation11] ss:$0 sm:$0xff]  ;;  %s2407_s23 = smov 104   ;;  %s2408_s1 = smov 120  }
  0x51   : > { %s671_s4 = scalar_lea.vmem %s2438_s0, %s1297_s3  ;;  %745 = vmatpush.bf16.msra.mxu0 %v1361_v17  ;;  %840 = vmatpush.bf16.msra.mxu3 %v1366_v19  ;;  %s2243_s3 = scalar_lea.vmem [#allocation16], %s2233_s29 }
  0x52   : > { %v673_v0 = vld [vmem:[%s671_s4] sm:$0xff]  ;;  %v1539_v3 = vpop.eup %1538  ;;  %806 = vmatpush.bf16.msra.mxu2 %v1364_v18  ;;  %s2409_s16 = smov 112   ;;  %s1296_s17 = sshll.u32 %s2230_s27, 3 }
  0x53   : > { %v675_v1 = vsel %vm674_vm0, %v673_v0, 0.0  ;;  %v679_v4 = vmul.f32 32.0, %v1539_v3  ;;  %vm683_vm1 = vweird.f32 %v1539_v3  ;;  %s2261_s4 = scalar_lea.vmem [#allocation20], %s1296_s17  ;;  %s981_s22 = sshll.u32 %s2236_s20, 4  ;;  %s982_s22 = int_to_ptr.vmem [resolvable:$true] %s981_s22 }
  0x54   : > { %676 = vadd.xlane.f32.xlu0 %v675_v1  ;;  %872 = vmatpush.bf16.msrb.mxu1 %v1369_v37  ;;  %s2268_s15 = sshll.u32 %s1966_s21, 4  ;;  %s939_s26 = sand.u32 1, %s2103_s24  }
  0x55   : > { %v680_v5 = vsub.f32 1.0, %v679_v4  ;;  %s980_s14 = scalar_lea.hbm %s2394_s13, %s2268_s15  ;;  %s2277_s17 = scalar_lea.sflag [#allocation18], %s939_s26 }
  0x56   : > { %s983_s18 = sshll.u32 %s980_s14, 4  ;;  %s1804_s30 = scalar_lea.hbm %s2394_s13, 32  ;;  %s984_s18 = int_to_ptr.hbm [resolvable:$true] %s983_s18 }
  0x57   : > { %v681_v6 = vmul.f32 %v1539_v3, %v680_v5 }
  0x58   : > { %873 = vmatpush.bf16.msrb.mxu1 %v1368_v38 }
  0x59   : > { %v682_v7 = vadd.f32 %v1539_v3, %v681_v6 }
  0x5b   : > { %v684_v8 = vsel %vm683_vm1, %v1539_v3, %v682_v7 }
  0xc7   : > { %v677_v9 = vpop.xlane.xlu0 %676 }
  0xc8   : > { %v685_v10 = vmul.f32 %v684_v8, %v677_v9 }
  0xca   : > { %v686_v11 = vsub.f32 %v673_v0, %v685_v10 }
  0xcc   : > { %v687_v12 = vmul.f32 %v686_v11, %v686_v11 }
  0xce   : > { %v688_v13 = vsel %vm674_vm0, %v687_v12, 0.0 }
  0xcf   : > { %689 = vadd.xlane.f32.xlu0 %v688_v13 }
 0x142   : > { %v690_v20 = vpop.xlane.xlu0 %689 }
 0x143   : > { %v691_v21 = vmul.f32 %v690_v20, %v684_v8 }
 0x145   : > { %v692_v22 = vadd.f32 1e-05, %v691_v21 }
 0x147   : > { %1540 = vrsqrt.f32 %v692_v22  ;;  %vm699_vm3 = vweird.f32 %v692_v22 }
 0x14d   : > { %v1541_v23 = vpop.eup %1540 }
 0x14e   : > { %v694_v24 = vmul.f32 %v1541_v23, %v692_v22  ;;  %vm700_vm2 = vweird.f32 %v1541_v23 }
 0x14f   : > { %vm701_vm4 = vmor %vm699_vm3, %vm700_vm2 }
 0x150   : > { %v695_v25 = vmul.f32 %v1541_v23, %v694_v24 }
 0x152   : > { %v696_v26 = vmul.f32 0.5, %v695_v25 }
 0x154   : > { %v697_v27 = vsub.f32 1.5, %v696_v26 }
 0x156   : > { %v698_v28 = vmul.f32 %v1541_v23, %v697_v27 }
 0x158   : > { %v702_v30 = vsel %vm701_vm4, %v1541_v23, %v698_v28 }
 0x159   : > { %v703_v31 = vmul.f32 %v702_v30, %v686_v11 }
 0x15b   : > { %v708_v33 = vmul.f32 %v1532_v29, %v703_v31 }
 0x15d   : > { %v713_v34 = vadd.f32 %v1533_v32, %v708_v33 }
 0x15f   : > { %v714_v35 = vpack.c.bf16 %v713_v34, %v713_v34 }
 0x161   : > { %1306 = vmatmul.msk.bf16.vlgmr.msra.gmra.mxu0 %vm674_vm0, %v714_v35  ;;  %1320 = vmatmul.msk.bf16.vlgmr.msra.gmra.mxu2 %vm674_vm0, %v714_v35 }
 0x162   : > { %1329 = vmatmul.msk.bf16.vlgmr.msra.gmra.mxu3 %vm674_vm0, %v714_v35 }
 0x1de   : > { %v747_v40 = vpop.f32.mrf.mxu0 }
 0x1df   : > { %v748_v41 = vadd.f32 %v1534_v39, %v747_v40 }
 0x1e1   : > { %1542 = vtanh.f32 %v748_v41 }
 0x1e4   : > { %v808_v44 = vpop.f32.mrf.mxu2 }
 0x1e5   : > { %v809_v45 = vadd.f32 %v1535_v42, %v808_v44  ;;  %v842_v46 = vpop.f32.mrf.mxu3 }
 0x1e6   : > { %v843_v47 = vadd.f32 %v1536_v43, %v842_v46  ;;  %v749_v48 = vpop.f32.mrf.mxu0 }
 0x1e7   : > { %v1543_v49 = vpop.eup %1542  ;;  %v812_v50 = vmul.f32 0.35355338, %v809_v45 }
 0x1e8   : > { %v752_v51 = vpack.c.bf16 %v1543_v49, %v1543_v49  ;;  %v882_v52 = vpack.c.bf16 %v843_v47, %v843_v47 }
 0x1e9   : > { %v879_v53 = vpack.c.bf16 %v812_v50, %v812_v50 }
 0x1ea   : > { %883 = vst.msk [vmem:[%s2236_s20] sm:$0xf] %vm880_vm5, %v882_v52  ;;  %924 = vrot.lane.b32.xlu2 %v882_v52, %s2407_s23  ;;  %893 = vrot.lane.b32.xlu1 %v882_v52, %s2408_s1 }
 0x1eb   : > { %881 = vst.msk [vmem:[%s2243_s3] sm:$0xf] %vm880_vm5, %v879_v53  ;;  %1311 = vmatmul.msk.bf16.vlgmr.msra.gmra.mxu1 %vm761_vm6, %v752_v51 }
 0x1ec   : > { %v810_v54 = vpop.f32.mrf.mxu2 }
 0x1ed   : > { %v844_v55 = vpop.f32.mrf.mxu3 }
 0x1f2   : > { %909 = vrot.lane.b32.xlu1 %v882_v52, %s2409_s16  ;;  %887 = vrot.lane.b32.xlu2 %v879_v53, %s2408_s1 }
 0x1fa   : > { %904 = vrot.lane.b32.xlu1 %v879_v53, %s2409_s16 }
 0x1fb   : > { %1338 = vmatmul.msk.bf16.vlgmr.msrb.gmra.mxu1 %vm674_vm0, %v714_v35 }
 0x202   : > { %919 = vrot.lane.b32.xlu1 %v879_v53, %s2407_s23 }
 0x244   : > { %v925_v56 = vpop.permute.xlu2 %924 }
 0x245   : > { %1346 = vst.msk [vmem:[%s2236_s20 + $0xc] sm:$0xf] %vm880_vm5, %v925_v56 }
 0x24c   : > { %v888_v57 = vpop.permute.xlu2 %887 }
 0x24d   : > { %1339 = vst.msk [vmem:[%s2243_s3 + $0x4] sm:$0xf] %vm880_vm5, %v888_v57 }
 0x25c   : > { %v894_v58 = vpop.permute.xlu1 %893 }
 0x25d   : > { %1340 = vst.msk [vmem:[%s2236_s20 + $0x4] sm:$0xf] %vm880_vm5, %v894_v58 }
 0x264   : > { %v910_v59 = vpop.permute.xlu1 %909 }
 0x265   : > { %1343 = vst.msk [vmem:[%s2236_s20 + $0x8] sm:$0xf] %vm880_vm5, %v910_v59  ;;  %s1798_s20 = sshra.s32 %s984_s18, 4  ;;  %s1799_s20 = int_to_ptr.hbm [resolvable:$true] %s1798_s20 }
 0x266   : > { %s1800_s23 = scalar_lea.hbm %s1799_s20, 16  ;;  %p1805_p5 = scmp.lt.s32.totalorder %s1799_s20, %s2394_s13 }
 0x267   : > { %p1801_p1 = scmp.ne.s32.totalorder %s1799_s20, %s1800_s23  ;;  %p1806_p6 = scmp.lt.s32.totalorder %s1804_s30, %s1800_s23 }
 0x268   : > { %v774_v60 = vpop.f32.mrf.mxu1 }
 0x269   : > { %778 = vst.msk [vmem:[%s2261_s4] sm:$0xff] %vm674_vm0, %v774_v60  ;;  %p1802_p2 = pnand %p1801_p1, %p2115_p4  ;;  %p1807_p7 = por %p1806_p6, %p1805_p5 }
 0x26b   : > { %p1803_p3 = pneg %p1802_p2 }
 0x26c   : > { %v905_v61 = vpop.permute.xlu1 %904 }
 0x26d   : > { %1342 = vst.msk [vmem:[%s2243_s3 + $0x8] sm:$0xf] %vm880_vm5, %v905_v61  ;;  %p1808_p9 = pnand %p1807_p7, %p1803_p3 }
 0x270   : > { %v776_v62 = vpop.f32.mrf.mxu1 }
 0x271   : > { %1811 = shalt.err (!%p1808_p9)
}
 0x272   : > { %s2410_s24 = smov 64   ;;  %s1991_s2 = smov 4   ;;  %v1537_v0 = vld [vmem:[#allocation14] ss:$0 sm:$0xff] }
 0x273   : > { %1406 = dma.vmem_to_hbm [thread:$0]  (%p2115_p4), %s982_s22, 256, %s984_s18, %s2277_s17, %s2410_s24, %s2410_s24, %s1991_s2  }
 0x274   : > { %s2439_s0 = sshll.u32 %s2243_s3, 4  ;;  %s962_s16 = scalar_lea.hbm %s2393_s12, %s2268_s15  ;;  %v920_v63 = vpop.permute.xlu1 %919  ;;  %s964_s0 = int_to_ptr.vmem [resolvable:$true] %s2439_s0 }
 0x275   : > { %s965_s30 = sshll.u32 %s962_s16, 4  ;;  %s1358_s14 = sshll.u32 %s1966_s21, 3  ;;  %1345 = vst.msk [vmem:[%s2243_s3 + $0xc] sm:$0xf] %vm880_vm5, %v920_v63  ;;  %s966_s30 = int_to_ptr.hbm [resolvable:$true] %s965_s30 }
 0x276   : > { %s935_s26 = scalar_lea.sflag [#allocation4], %s2230_s27  ;;  %s1826_s20 = sshra.s32 %s966_s30, 4  ;;  %s1827_s20 = int_to_ptr.hbm [resolvable:$true] %s1826_s20 }
 0x277   : > { %s1828_s25 = scalar_lea.hbm %s1827_s20, 16  ;;  %s1832_s23 = scalar_lea.hbm %s2393_s12, 32 }
 0x278   : > { %p1829_p10 = scmp.ne.s32.totalorder %s1827_s20, %s1828_s25  ;;  %p1833_p13 = scmp.lt.s32.totalorder %s1827_s20, %s2393_s12 }
 0x279   : > { %p1834_p0 = scmp.lt.s32.totalorder %s1832_s23, %s1828_s25 }
 0x27a   : > { %p1830_p11 = pnand %p1829_p10, %p2115_p4 }
 0x27b   : > { %p1835_p1 = por %p1834_p0, %p1833_p13 }
 0x27c   : > { %p1831_p12 = pneg %p1830_p11 }
 0x27e   : > { %p1836_p2 = pnand %p1835_p1, %p1831_p12 }
 0x280   : > { %1839 = shalt.err (!%p1836_p2)
}
 0x281   : > { %s2440_s21 = smov 64   ;;  %s2441_s22 = sld [smem:[#allocation45_spill]]  ;;  %v875_v1 = vpop.f32.mrf.mxu1 }
 0x282   : > { %1405 = dma.vmem_to_hbm [thread:$0]  (%p2115_p4), %s964_s0, 256, %s966_s30, %s935_s26, %s2440_s21, %s2440_s21, %s1991_s2   ;;  %v876_v2 = vadd.f32 %v1537_v0, %v875_v1 }
 0x283   : > { %s1017_s6 = sshll.u32 %s2261_s4, 4  ;;  %s950_s20 = scalar_lea.sflag [#allocation21], %s2230_s27  ;;  %s1018_s6 = int_to_ptr.vmem [resolvable:$true] %s1017_s6 }
 0x287   : > { %s2442_s5 = smov %s2441_s22  ;;  %s1015_s18 = scalar_lea.hbm %s2441_s22, %s1358_s14 }
 0x288   : > { %s1019_s24 = sshll.u32 %s1015_s18, 4  ;;  %s1860_s30 = scalar_lea.hbm %s2442_s5, 16  ;;  %s1020_s24 = int_to_ptr.hbm [resolvable:$true] %s1019_s24 }
 0x289   : > { %s1854_s25 = sshra.s32 %s1020_s24, 4  ;;  %s1855_s25 = int_to_ptr.hbm [resolvable:$true] %s1854_s25 }
 0x28a   : > { %s1856_s23 = scalar_lea.hbm %s1855_s25, 8  ;;  %p1861_p7 = scmp.lt.s32.totalorder %s1855_s25, %s2442_s5 }
 0x28b   : > { %p1857_p3 = scmp.ne.s32.totalorder %s1855_s25, %s1856_s23  ;;  %p1862_p9 = scmp.lt.s32.totalorder %s1860_s30, %s1856_s23 }
 0x28d   : > { %p1858_p5 = pnand %p1857_p3, %p2115_p4  ;;  %p1863_p10 = por %p1862_p9, %p1861_p7 }
 0x28f   : > { %p1859_p6 = pneg %p1858_p5 }
 0x291   : > { %p1864_p11 = pnand %p1863_p10, %p1859_p6 }
 0x293   : > { %1867 = shalt.err (!%p1864_p11)
}
 0x294   : > { %1408 = dma.vmem_to_hbm [thread:$0]  (%p2115_p4), %s1018_s6, 128, %s1020_s24, %s950_s20   ;;  %v884_v3 = vpack.c.bf16 %v876_v2, %v876_v2  ;;  %v877_v4 = vpop.f32.mrf.mxu1 }
 0x295   : > { %s657_s27 = scalar_lea.vmem [#allocation19], %s2233_s29  ;;  %s2443_s4 = smov 112  }
 0x296   : > { %885 = vst.msk [vmem:[%s657_s27] sm:$0xf] %vm880_vm5, %v884_v3  ;;  %914 = vrot.lane.b32.xlu2 %v884_v3, %s2443_s4  ;;  %s2444_s3 = smov 120   ;;  %s2445_s16 = smov 104  }
 0x297   : > { %899 = vrot.lane.b32.xlu0 %v884_v3, %s2444_s3  ;;  %s2446_s18 = sld [smem:[#allocation44_spill]]  ;;  %s999_s20 = sshll.u32 %s657_s27, 4  ;;  %s1000_s20 = int_to_ptr.vmem [resolvable:$true] %s999_s20 }
 0x29d   : > { %s2447_s24 = smov %s2446_s18  ;;  %s998_s29 = scalar_lea.hbm %s2446_s18, %s2268_s15 }
 0x29e   : > { %929 = vrot.lane.b32.xlu2 %v884_v3, %s2445_s16  ;;  %s1001_s25 = sshll.u32 %s998_s29, 4  ;;  %s1888_s26 = scalar_lea.hbm %s2447_s24, 32  ;;  %s1002_s25 = int_to_ptr.hbm [resolvable:$true] %s1001_s25 }
 0x29f   : > { %s1882_s23 = sshra.s32 %s1002_s25, 4  ;;  %s1883_s23 = int_to_ptr.hbm [resolvable:$true] %s1882_s23 }
 0x2a0   : > { %s1884_s1 = scalar_lea.hbm %s1883_s23, 16  ;;  %p1889_p1 = scmp.lt.s32.totalorder %s1883_s23, %s2447_s24 }
 0x2a1   : > { %p1885_p12 = scmp.ne.s32.totalorder %s1883_s23, %s1884_s1  ;;  %p1890_p2 = scmp.lt.s32.totalorder %s1888_s26, %s1884_s1 }
 0x2a3   : > { %p1886_p13 = pnand %p1885_p12, %p2115_p4  ;;  %p1891_p3 = por %p1890_p2, %p1889_p1 }
 0x2a5   : > { %p1887_p0 = pneg %p1886_p13 }
 0x2a7   : > { %p1892_p5 = pnand %p1891_p3, %p1887_p0 }
 0x2f0   : > { %v915_v5 = vpop.permute.xlu2 %914 }
 0x2f1   : > { %1344 = vst.msk [vmem:[%s657_s27 + $0x8] sm:$0xf] %vm880_vm5, %v915_v5 }
 0x2f8   : > { %v930_v6 = vpop.permute.xlu2 %929 }
 0x2f9   : > { %1347 = vst.msk [vmem:[%s657_s27 + $0xc] sm:$0xf] %vm880_vm5, %v930_v6 }
 0x309   : > { %v900_v7 = vpop.permute.xlu0 %899 }
 0x30a   : > { %1341 = vst.msk [vmem:[%s657_s27 + $0x4] sm:$0xf] %vm880_vm5, %v900_v7 }
 0x30b   : > { %1895 = shalt.err (!%p1892_p5)
}
 0x30c   : > { %1407 = dma.vmem_to_hbm [thread:$0]  (%p2115_p4), %s1000_s20, 256, %s1002_s25, %s2277_s17, %s2440_s21, %s2440_s21, %s1991_s2  }
 0x30d PF: > { %s2448_s27 = sld [smem:[#allocation33_spill]] }
 0x30e   : > { %s2449_s4 = sld [smem:[#allocation30_spill]] }
 0x313   : > { %p1467_p6 = scmp.ge.s32.totalorder %s2448_s27, 2 }
 0x314   : > { %s1031_s16 = sand.u32 1, %s2449_s4  }
 0x315   : > { %p1439_p7 = pnand %p1467_p6, %p2124_p8  ;;  %s1032_s22 = scalar_lea.sflag [#allocation4], %s1031_s16 }
 0x317   : > { %p1440_p9 = pneg %p1439_p7 }
 0x319   : > { %1941 = dma.done.wait (%p1440_p9), %s1032_s22, 256  }
 0x31a   : > { %1943 = vsyncadd (%p1440_p9), %s1032_s22, 4294967040  ;;  %s2451_s6 = sadd.s32 4294967294, %s2448_s27  }
 0x31b   : > { %s1041_s28 = sand.u32 1, %s2451_s6  }
 0x31c   : > { %s1042_s18 = scalar_lea.sflag [#allocation18], %s1041_s28 }
 0x31d   : > { %1945 = dma.done.wait (%p1440_p9), %s1042_s18, 512  }
 0x31e   : > { %1947 = vsyncadd (%p1440_p9), %s1042_s18, 4294966784  ;;  %s1062_s29 = scalar_lea.sflag [#allocation21], %s1031_s16 }
 0x31f   : > { %1949 = dma.done.wait (%p1440_p9), %s1062_s29, 128  }
 0x320   : > { %1951 = vsyncadd (%p1440_p9), %s1062_s29, 4294967168  ;;  %s40_s23 = sadd.s32 1, %s2448_s27   ;;  %s2452_s17 = sld [smem:[#allocation31_spill]] }
 0x321   : > { %p37_p4 = scmp.ge.s32.totalorder %s40_s23, 4   ;;  %s2453_s20 = sld [smem:[#allocation36_spill]] }
 0x322   : > { %s2454_s21 = sld [smem:[#allocation32_spill]]  ;;  %s2456_s18 = smov %s1958_s19 }
 0x323   : > { %s2455_s22 = sld [smem:[#allocation34_spill]]  ;;  %39 = sbr.rel (!%p37_p4) target bundleno = 23 (0x17), region = 194 }
 0x326   : > { %s2457_s19 = smov %s2452_s17 }
 0x328   :  { %1068 = vsyncpa [#allocation3], 1 }
 0x329   :  { %1070 = vsyncpa [#allocation3 + $0x1], 1 }
 0x32a   :  { %1071 = vsyncpa [#allocation6], 1 }
 0x32b   :  { %1072 = vsyncpa [#allocation9], 1 }
 0x32c   :  { %1073 = vsyncpa [#allocation12], 1 }
 0x32d   :  { %1074 = vsyncpa [#allocation15], 1 }
 0x32e   :  { %1075 = vsyncpa [#allocation4], 1 }
 0x32f   :  { %1077 = vsyncpa [#allocation4 + $0x1], 1 }
 0x330   :  { %1078 = vsyncpa [#allocation18], 1 }
 0x331   :  { %1080 = vsyncpa [#allocation18 + $0x1], 1 }
 0x332   :  { %1081 = vsyncpa [#allocation21], 1 }
 0x333   :  { %1083 = vsyncpa [#allocation21 + $0x1], 1 }

</bundles_post_ra>
